<compile_context>
chip_gen: v6e
topology: v6e:2x2x1
jax: 0.10.0
libtpu: 0.0.40
codegen_flags: <defaults>
</compile_context>

<pallas_src>
import functools

import jax
import jax.numpy as jnp
from jax.experimental import pallas as pl
from jax.experimental.pallas import tpu as pltpu


# ---------------------------------------------------------------------------
# Pallas kernel
# ---------------------------------------------------------------------------
def _simam_kernel(x_ref, o_ref, *, inv_hw, inv_n, lam):
    """Rows = (b, c) pairs, columns = H*W.  out = x * sigmoid(e_inv)."""
    x = x_ref[...].astype(jnp.float32)

    # Single pass: row sum + row sum-of-squares (x touched once).
    s1 = jnp.sum(x, axis=1, keepdims=True)
    s2 = jnp.sum(x * x, axis=1, keepdims=True)

    mu = s1 * inv_hw
    # sum((x - mu)^2) = s2 - s1 * mu   ->  divide by n = H*W - 1
    var = (s2 - s1 * mu) * inv_n

    d = x - mu
    inv_den = pl.reciprocal(4.0 * (var + lam), approx=True)   # EUP slot
    e_inv = d * d * inv_den + 0.5

    o_ref[...] = (x * jax.nn.sigmoid(e_inv)).astype(o_ref.dtype)


# ---------------------------------------------------------------------------
# Wrapper
# ---------------------------------------------------------------------------
def simam(x_nchw, lam=1e-4):
    """SimAM forward.  x_nchw: (B, C, H, W) -> (B, C, H, W)."""
    B, C, H, W = x_nchw.shape
    R, HW = B * C, H * W
    x2 = x_nchw.reshape(R, HW)                 # pure reshape in NCHW order

    # Row-tile sizing: keep each block <= ~4 MiB so that the double-buffered
    # input + output blocks (4 buffers) stay well under scoped VMEM on
    # v5e / v6e / v7x while remaining far above the per-step overhead floor.
    block_budget_bytes = 4 * 1024 * 1024
    bytes_per_row = HW * 4                      # f32 compute width
    if R * bytes_per_row <= block_budget_bytes:
        tR = R                                  # whole array in one block dim
    else:
        tR = max(8, (block_budget_bytes // bytes_per_row) // 8 * 8)

    kern = functools.partial(
        _simam_kernel,
        inv_hw=1.0 / float(HW),
        inv_n=1.0 / float(HW - 1),
        lam=float(lam),
    )

    out2 = pl.pallas_call(
        kern,
        out_shape=jax.ShapeDtypeStruct((R, HW), x2.dtype),
        grid=(pl.cdiv(R, tR),),
        in_specs=[pl.BlockSpec((tR, HW), lambda i: (i, 0))],
        out_specs=pl.BlockSpec((tR, HW), lambda i: (i, 0)),
        compiler_params=pltpu.CompilerParams(
            dimension_semantics=("parallel",)),
    )(x2)

    return out2.reshape(B, C, H, W)


# ---------------------------------------------------------------------------
# Pure-JAX reference (mirrors the PyTorch module)
# ---------------------------------------------------------------------------
def simam_reference(x, lam=1e-4):
    n = x.shape[2] * x.shape[3] - 1
    mu = jnp.mean(x, axis=(2, 3), keepdims=True)
    var = jnp.sum((x - mu) ** 2, axis=(2, 3), keepdims=True) / n
    e_inv = (x - mu) ** 2 / (4.0 * (var + lam)) + 0.5
    return x * jax.nn.sigmoid(e_inv)


# ---------------------------------------------------------------------------
if __name__ == "__main__":
    key = jax.random.PRNGKey(0)
    B, C, H, W = 2, 4, 16, 16
    x = jax.random.normal(key, (B, C, H, W), jnp.float32)

    out = jax.block_until_ready(simam(x, lam=1e-4))
    ref = jax.block_until_ready(simam_reference(x, lam=1e-4))

    assert out.shape == (B, C, H, W), out.shape
    assert bool(jnp.all(jnp.isfinite(out)))
    # approx reciprocal (EUP) introduces ~1e-3-level relative error in e_inv,
    # which sigmoid further damps; 1e-2 tolerance is comfortably loose.
    assert bool(jnp.allclose(out, ref, rtol=1e-2, atol=1e-2)), "mismatch vs reference"
    print("KERNEL_OK")
</pallas_src>

<mosaic_0001>
module attributes {stable_mosaic.version = 11 : i64} {
  func.func @_simam_kernel(%arg0: i32, %arg1: memref<8x256xf32, #tpu.memory_space<vmem>>, %arg2: memref<8x256xf32, #tpu.memory_space<vmem>>) attributes {dimension_semantics = [#tpu.dimension_semantics<parallel>], iteration_bounds = array<i64: 1>, scalar_prefetch = 0 : i64, scratch_operands = 0 : i64, tpu.core_type = #tpu.core_type<tc>, window_params = [{transform_indices = @transform_0, window_bounds = array<i64: 8, 256>}, {transform_indices = @transform_1, window_bounds = array<i64: 8, 256>}]} {
    %c0 = arith.constant 0 : index
    %c0_0 = arith.constant 0 : index
    %0 = vector.load %arg1[%c0, %c0_0] : memref<8x256xf32, #tpu.memory_space<vmem>>, vector<8x256xf32>
    %cst = arith.constant dense<0.000000e+00> : vector<8xf32>
    %1 = vector.multi_reduction <add>, %0, %cst [1] : vector<8x256xf32> to vector<8xf32>
    %2 = vector.shape_cast %1 : vector<8xf32> to vector<8x1xf32>
    %3 = arith.mulf %0, %0 : vector<8x256xf32>
    %cst_1 = arith.constant dense<0.000000e+00> : vector<8xf32>
    %4 = vector.multi_reduction <add>, %3, %cst_1 [1] : vector<8x256xf32> to vector<8xf32>
    %5 = vector.shape_cast %4 : vector<8xf32> to vector<8x1xf32>
    %cst_2 = arith.constant 3.906250e-03 : f32
    %6 = vector.broadcast %cst_2 : f32 to vector<8x1xf32>
    %7 = arith.mulf %2, %6 : vector<8x1xf32>
    %8 = arith.mulf %2, %7 : vector<8x1xf32>
    %9 = arith.subf %5, %8 : vector<8x1xf32>
    %cst_3 = arith.constant 0.00392156886 : f32
    %10 = vector.broadcast %cst_3 : f32 to vector<8x1xf32>
    %11 = arith.mulf %9, %10 : vector<8x1xf32>
    %12 = vector.broadcast %7 : vector<8x1xf32> to vector<8x256xf32>
    %13 = arith.subf %0, %12 : vector<8x256xf32>
    %cst_4 = arith.constant 9.99999974E-5 : f32
    %14 = vector.broadcast %cst_4 : f32 to vector<8x1xf32>
    %15 = arith.addf %11, %14 : vector<8x1xf32>
    %cst_5 = arith.constant 4.000000e+00 : f32
    %16 = vector.broadcast %cst_5 : f32 to vector<8x1xf32>
    %17 = arith.mulf %16, %15 : vector<8x1xf32>
    %18 = tpu.reciprocal %17 {approx = true} : vector<8x1xf32> -> vector<8x1xf32>
    %19 = arith.mulf %13, %13 : vector<8x256xf32>
    %20 = vector.broadcast %18 : vector<8x1xf32> to vector<8x256xf32>
    %21 = arith.mulf %19, %20 : vector<8x256xf32>
    %cst_6 = arith.constant 5.000000e-01 : f32
    %22 = vector.broadcast %cst_6 : f32 to vector<8x256xf32>
    %23 = arith.addf %21, %22 : vector<8x256xf32>
    %24 = arith.negf %23 : vector<8x256xf32>
    %25 = math.exp %24 : vector<8x256xf32>
    %cst_7 = arith.constant 1.000000e+00 : f32
    %26 = vector.broadcast %cst_7 : f32 to vector<8x256xf32>
    %27 = arith.addf %26, %25 : vector<8x256xf32>
    %28 = arith.divf %26, %27 : vector<8x256xf32>
    %29 = arith.mulf %0, %28 : vector<8x256xf32>
    %c0_8 = arith.constant 0 : index
    %c0_9 = arith.constant 0 : index
    %30 = vector.load %arg2[%c0_8, %c0_9] : memref<8x256xf32, #tpu.memory_space<vmem>>, vector<8x256xf32>
    tpu.vector_store %arg2[%c0_8, %c0_9], %29 {strides = array<i32>} : memref<8x256xf32, #tpu.memory_space<vmem>>, vector<8x256xf32>,
    return
  }
  func.func @transform_0(%arg0: i32) -> (i32, i32) {
    %c0_i32 = arith.constant 0 : i32
    %c0_i32_0 = arith.constant 0 : i32
    return %arg0, %c0_i32 : i32, i32
  }
  func.func @transform_1(%arg0: i32) -> (i32, i32) {
    %c0_i32 = arith.constant 0 : i32
    %c0_i32_0 = arith.constant 0 : i32
    return %arg0, %c0_i32 : i32, i32
  }
}

</mosaic_0001>

<bundles_post_ra>
// kernel: tpu_custom_call.1
= control target key start
LH: loop header
LB: loop body
LE: loop exit
PB: predicated region body
PF: predicated region fallthrough
CT: control target
= control target key end

     0   :  { %6 = vsyncpa [#allocation3], 0  ;;  %s153_s0 = inlined_call_operand.hbm [shape: f32[8,256], index: 0, kind: input, shape index: {}]   ;;  %s154_s1 = inlined_call_operand.hbm [shape: f32[8,256], index: 1, kind: output, shape index: {}]  }
   0x1   :  { %7 = vsyncpa [#allocation4], 0  ;;  %s135_s6 = smov [#allocation2]  }
   0x2   :  { %s14_s7 = sshll.u32 %s135_s6, 4  ;;  %s15_s7 = int_to_ptr.vmem [resolvable:$true] %s14_s7 }
   0x3   :  { %s99_s8 = scalar_lea.vmem %s15_s7, 256  ;;  %p104_p1 = scmp.lt.s32.totalorder %s15_s7, %s15_s7 }
   0x4   :  { %p100_p0 = scmp.ne.s32.totalorder %s15_s7, %s99_s8  ;;  %p105_p2 = scmp.lt.s32.totalorder %s99_s8, %s99_s8 }
   0x6   :  { %p106_p3 = por %p105_p2, %p104_p1 }
   0x8   :  { %p107_p4 = pnand %p106_p3, %p100_p0 }
   0xa   :  { %110 = shalt.err (!%p107_p4)
}
   0xb   :  { %17 = dma.hbm_to_vmem [thread:$0]  %s153_s0, 256, %s15_s7, [#allocation3]  }
   0xc   :  { %131 = dma.done.wait [#allocation3], 256  }
   0xd   :  { %132 = vsyncadd [#allocation3], 4294967040  ;;  %v21_v0 = vld [vmem:[#allocation2] sm:$0xff]  ;;  %v22_v1 = vld [vmem:[#allocation2 + $0x8] sm:$0xff]  ;;  %s136_s0 = smov [#allocation5]  }
   0xe   :  { %v23_v2 = vadd.f32 %v22_v1, %v21_v0  ;;  %v26_v3 = vmul.f32 %v21_v0, %v21_v0  ;;  %v27_v4 = vmul.f32 %v22_v1, %v22_v1  ;;  %s68_s11 = sshll.u32 %s136_s0, 4  ;;  %s69_s11 = int_to_ptr.vmem [resolvable:$true] %s68_s11 }
   0xf   :  { %s111_s12 = scalar_lea.vmem %s69_s11, 256  ;;  %p116_p6 = scmp.lt.s32.totalorder %s69_s11, %s69_s11 }
  0x10   :  { %24 = vadd.xlane.f32.xlu0 %v23_v2  ;;  %v28_v5 = vadd.f32 %v27_v4, %v26_v3  ;;  %p112_p5 = scmp.ne.s32.totalorder %s69_s11, %s111_s12  ;;  %p117_p7 = scmp.lt.s32.totalorder %s111_s12, %s111_s12 }
  0x12   :  { %p118_p8 = por %p117_p7, %p116_p6 }
  0x14   :  { %29 = vadd.xlane.f32.xlu0 %v28_v5  ;;  %p119_p9 = pnand %p118_p8, %p112_p5 }
  0x99   :  { %v25_v6 = vpop.xlane.xlu0 %24 }
  0x9a   :  { %v31_v7 = vmul.f32 0.00390625, %v25_v6 }
  0x9c   :  { %v32_v8 = vmul.f32 %v31_v7, %v25_v6  ;;  %v35_v14 = vsub.f32 %v21_v0, %v31_v7  ;;  %v36_v15 = vsub.f32 %v22_v1, %v31_v7 }
  0x9d   :  { %v30_v9 = vpop.xlane.xlu0 %29 }
  0x9e   :  { %v33_v10 = vsub.f32 %v30_v9, %v32_v8  ;;  %v40_v16 = vmul.f32 %v35_v14, %v35_v14  ;;  %v41_v17 = vmul.f32 %v36_v15, %v36_v15 }
  0xa0   :  { %v34_v11 = vmul.f32 0.003921569, %v33_v10 }
  0xa2   :  { %v37_v12 = vadd.f32 0.0001, %v34_v11 }
  0xa4   :  { %v38_v13 = vmul.f32 4.0, %v37_v12 }
  0xa6   :  { %81 = vrcp.f32 %v38_v13 }
  0xb3   :  { %v82_v18 = vpop.eup %81 }
  0xb4   :  { %v42_v19 = vmul.f32 %v82_v18, %v40_v16  ;;  %v43_v20 = vmul.f32 %v82_v18, %v41_v17 }
  0xb6   :  { %v44_v21 = vadd.f32 0.5, %v42_v19  ;;  %v45_v22 = vadd.f32 0.5, %v43_v20 }
  0xb8   :  { %v77_v23 = vmul.f32 -1.442695, %v44_v21  ;;  %v78_v24 = vmul.f32 -1.442695, %v45_v22 }
  0xba   :  { %83 = vpow2.f32 %v77_v23 }
  0xbb   :  { %85 = vpow2.f32 %v78_v24 }
  0xc7   :  { %v84_v25 = vpop.eup %83 }
  0xc8   :  { %v86_v26 = vpop.eup %85  ;;  %v52_v27 = vadd.f32 1.0, %v84_v25 }
  0xc9   :  { %v53_v28 = vadd.f32 1.0, %v86_v26 }
  0xca   :  { %87 = vrcp.f32 %v52_v27 }
  0xcb   :  { %89 = vrcp.f32 %v53_v28 }
  0xd7   :  { %v88_v29 = vpop.eup %87 }
  0xd8   :  { %v90_v30 = vpop.eup %89  ;;  %v58_v31 = vmul.f32 %v88_v29, %v21_v0 }
  0xd9   :  { %v59_v32 = vmul.f32 %v90_v30, %v22_v1 }
  0xda   :  { %60 = vst [vmem:[#allocation5] sm:$0xff] %v58_v31 }
  0xdb   :  { %61 = vst [vmem:[#allocation5 + $0x8] sm:$0xff] %v59_v32 }
  0xdc   :  { %122 = shalt.err (!%p119_p9)
}
  0xdd   :  { %71 = dma.vmem_to_hbm [thread:$0]  %s69_s11, 256, %s154_s1, [#allocation4]  }
  0xde   :  { %133 = dma.done.wait [#allocation4], 256  }
  0xdf   :  { %134 = vsyncadd [#allocation4], 4294967040 }
  0xe0   :  { %75 = vsyncpa [#allocation3], 1 }
  0xe1   :  { %76 = vsyncpa [#allocation4], 1 }

</bundles_post_ra>
